<compile_context>
chip_gen: v5e
topology: v5e:2x2
jax: 0.10.0
libtpu: 0.0.40
codegen_flags: <defaults>
</compile_context>

<pallas_src>
import jax
import jax.numpy as jnp
from jax.experimental import pallas as pl
from jax.experimental.pallas import tpu as pltpu


def _relu_kernel(x_ref, o_ref):
    # Elementwise ReLU on the current VMEM tile: one VPU vmax per vreg,
    # completely hidden under the HBM DMAs of the auto-pipeline.
    o_ref[...] = jnp.maximum(x_ref[...], jnp.zeros((), dtype=x_ref.dtype))


# ~2 MiB per block keeps (in + out) * double-buffer under the smallest scoped
# VMEM default (16 MiB on v5e) with plenty of headroom, and is past the
# HBM-roofline knee on v5e/v6e/v7x.
_TARGET_BLOCK_BYTES = 2 * 1024 * 1024
# Widest lane-dense last dim first; all are multiples of 128. Wider stores ->
# fewer, longer DMA descriptors and unmasked vst on the output path.
_LANE_CANDIDATES = (16384, 8192, 4096, 2048, 1024, 512, 256, 128)


def _row_multiple(itemsize: int) -> int:
    # Sublane packing: 32-bit -> 8 rows/vreg, 16-bit -> 16, 8-bit -> 32.
    return max(8, 32 // max(1, itemsize))


def _tile_rows_for(rows: int, lanes: int, itemsize: int) -> int:
    """Rows per block, targeting ~2 MiB blocks.

    The result is either the full row extent (always a legal block dim) or a
    multiple of the dtype's sublane packing factor.
    """
    mult = _row_multiple(itemsize)
    target_rows = (_TARGET_BLOCK_BYTES // (lanes * itemsize)) // mult * mult
    target_rows = max(mult, target_rows)
    if rows <= target_rows:
        # Single full-extent block: block dims equal the array dims, which is
        # always a legal TPU block shape regardless of (8, 128) alignment.
        return rows
    return target_rows


def _relu_2d(x2d: jax.Array, tile_rows: int, lanes: int, donate: bool) -> jax.Array:
    rows = x2d.shape[0]
    itemsize = jnp.dtype(x2d.dtype).itemsize
    nbytes = rows * lanes * itemsize
    kwargs = {}
    if donate:
        kwargs["input_output_aliases"] = {0: 0}
    return pl.pallas_call(
        _relu_kernel,
        out_shape=jax.ShapeDtypeStruct((rows, lanes), x2d.dtype),
        grid_spec=pltpu.PrefetchScalarGridSpec(
            num_scalar_prefetch=0,
            grid=(pl.cdiv(rows, tile_rows),),
            in_specs=[pl.BlockSpec((tile_rows, lanes), lambda i: (i, 0))],
            out_specs=pl.BlockSpec((tile_rows, lanes), lambda i: (i, 0)),
        ),
        compiler_params=pltpu.CompilerParams(
            dimension_semantics=("parallel",),
        ),
        cost_estimate=pl.CostEstimate(
            flops=rows * lanes,
            transcendentals=0,
            bytes_accessed=2 * nbytes,  # one read + one write of the array
        ),
        **kwargs,
    )(x2d)


def relu_pallas(x: jax.Array, *, donate: bool = False) -> jax.Array:
    """ReLU via a Pallas TPU kernel. Works for any shape and numeric dtype."""
    if x.size == 0:
        return x
    orig_shape = x.shape
    total = x.size
    itemsize = jnp.dtype(x.dtype).itemsize

    # Fast path (common case): a lane count that divides x.size exactly ->
    # pure reshape in, pure reshape out, no padding, no slicing, no extra
    # HBM passes.
    for lanes in _LANE_CANDIDATES:
        if total % lanes == 0:
            rows = total // lanes
            tile_rows = _tile_rows_for(rows, lanes, itemsize)
            out2d = _relu_2d(x.reshape(rows, lanes), tile_rows, lanes, donate)
            return out2d.reshape(orig_shape)

    # Rare ragged fallback: x.size not a multiple of 128 -> pad once, slice once.
    lanes = 128
    padded_total = ((total + lanes - 1) // lanes) * lanes
    x_flat = jnp.pad(x.reshape(-1), (0, padded_total - total))
    rows = padded_total // lanes
    tile_rows = _tile_rows_for(rows, lanes, itemsize)
    # The padded buffer is a temporary, so it is always safe to donate it.
    out2d = _relu_2d(x_flat.reshape(rows, lanes), tile_rows, lanes, True)
    return out2d.reshape(-1)[:total].reshape(orig_shape)


if __name__ == "__main__":
    key = jax.random.PRNGKey(0)
    # NCHW input matching the PyTorch module: batch=2, channels=4, 16x16 spatial.
    x = jax.random.normal(key, (2, 4, 16, 16), dtype=jnp.float32)

    y = relu_pallas(x)
    jax.block_until_ready(y)

    # Sanity check against plain JAX ReLU.
    y_ref = jnp.maximum(x, 0.0)
    assert y.shape == x.shape and y.dtype == x.dtype
    assert jnp.allclose(y, y_ref), "mismatch vs reference ReLU"

    # Ragged shape exercises the pad/slice fallback path.
    x2 = jax.random.normal(jax.random.PRNGKey(1), (3, 5, 40, 40), dtype=jnp.float32)
    y2 = relu_pallas(x2)
    jax.block_until_ready(y2)
    assert jnp.allclose(y2, jnp.maximum(x2, 0.0)), "mismatch on ragged shape"

    # bf16 path exercises the 16-row sublane-packing tiling.
    x3 = jax.random.normal(jax.random.PRNGKey(2), (2, 8, 32, 32), dtype=jnp.bfloat16)
    y3 = relu_pallas(x3)
    jax.block_until_ready(y3)
    assert jnp.array_equal(y3, jnp.maximum(x3, jnp.bfloat16(0))), "mismatch on bf16"

    print("KERNEL_OK")
</pallas_src>

<mosaic_0001>
module attributes {stable_mosaic.version = 11 : i64} {
  func.func @_relu_kernel(%arg0: i32, %arg1: memref<1x2048xf32, #tpu.memory_space<vmem>>, %arg2: memref<1x2048xf32, #tpu.memory_space<vmem>>) attributes {dimension_semantics = [#tpu.dimension_semantics<parallel>], iteration_bounds = array<i64: 1>, scalar_prefetch = 0 : i64, scratch_operands = 0 : i64, tpu.core_type = #tpu.core_type<tc>, window_params = [{transform_indices = @transform_0, window_bounds = array<i64: 1, 2048>}, {transform_indices = @transform_1, window_bounds = array<i64: 1, 2048>}]} {
    %c0 = arith.constant 0 : index
    %c0_0 = arith.constant 0 : index
    %0 = vector.load %arg1[%c0, %c0_0] : memref<1x2048xf32, #tpu.memory_space<vmem>>, vector<1x2048xf32>
    %cst = arith.constant 0.000000e+00 : f32
    %1 = vector.broadcast %cst : f32 to vector<1x2048xf32>
    %2 = arith.maximumf %0, %1 : vector<1x2048xf32>
    %c0_1 = arith.constant 0 : index
    %c0_2 = arith.constant 0 : index
    %3 = vector.load %arg2[%c0_1, %c0_2] : memref<1x2048xf32, #tpu.memory_space<vmem>>, vector<1x2048xf32>
    tpu.vector_store %arg2[%c0_1, %c0_2], %2 {strides = array<i32>} : memref<1x2048xf32, #tpu.memory_space<vmem>>, vector<1x2048xf32>,
    return
  }
  func.func @transform_0(%arg0: i32) -> (i32, i32) {
    %c0_i32 = arith.constant 0 : i32
    %c0_i32_0 = arith.constant 0 : i32
    return %arg0, %c0_i32 : i32, i32
  }
  func.func @transform_1(%arg0: i32) -> (i32, i32) {
    %c0_i32 = arith.constant 0 : i32
    %c0_i32_0 = arith.constant 0 : i32
    return %arg0, %c0_i32 : i32, i32
  }
}

</mosaic_0001>

<bundles_post_ra>
// kernel: tpu_custom_call.1
= control target key start
LH: loop header
LB: loop body
LE: loop exit
PB: predicated region body
PF: predicated region fallthrough
CT: control target
= control target key end

     0   :  { %6 = vsyncpa [#allocation3], 0  ;;  %s118_s0 = inlined_call_operand.hbm [shape: f32[1,2048], index: 0, kind: input, shape index: {}]   ;;  %s119_s1 = inlined_call_operand.hbm [shape: f32[1,2048], index: 1, kind: output, shape index: {}]  }
   0x1   :  { %7 = vsyncpa [#allocation4], 0  ;;  %s13_s8 = sshll.u32 %s118_s0, 4  ;;  %s100_s9 = smov [#allocation2]   ;;  %s14_s8 = int_to_ptr.hbm [resolvable:$true] %s13_s8 }
   0x2   :  { %s15_s10 = sshll.u32 %s100_s9, 4  ;;  %s16_s10 = int_to_ptr.vmem [resolvable:$true] %s15_s10 }
   0x3   :  { %18 = dma.hbm_to_vmem [thread:$0]  %s14_s8, 256, %s16_s10, [#allocation3]  }
   0x4   :  { %96 = dma.done.wait [#allocation3], 256  }
   0x5   :  { %97 = vsyncadd [#allocation3], 4294967040  ;;  %s101_s11 = smov [#allocation5]   ;;  %s36_s15 = sshll.u32 %s119_s1, 4  ;;  %v23_v0 = vld [vmem:[#allocation2] sm:$0xff]  ;;  %v24_v1 = vld [vmem:[#allocation2 + $0x8] sm:$0xff]  ;;  %s37_s15 = int_to_ptr.hbm [resolvable:$true] %s36_s15 }
   0x6   :  { %s34_s12 = sshll.u32 %s101_s11, 4  ;;  %v25_v2 = vmax.f32 %v23_v0, 0.0  ;;  %v26_v3 = vmax.f32 %v24_v1, 0.0  ;;  %s35_s12 = int_to_ptr.vmem [resolvable:$true] %s34_s12 }
   0x8   :  { %27 = vst [vmem:[#allocation5] sm:$0xff] %v25_v2 }
   0x9   :  { %28 = vst [vmem:[#allocation5 + $0x8] sm:$0xff] %v26_v3 }
   0xa   :  { %39 = dma.vmem_to_hbm [thread:$0]  %s35_s12, 256, %s37_s15, [#allocation4]  }
   0xb   :  { %98 = dma.done.wait [#allocation4], 256  }
   0xc   :  { %99 = vsyncadd [#allocation4], 4294967040 }
   0xd   :  { %44 = vsyncpa [#allocation3], 1 }
   0xe   :  { %45 = vsyncpa [#allocation4], 1 }

</bundles_post_ra>
